<compile_context>
chip_gen: v6e
topology: v6e:2x2x1
jax: 0.10.0
libtpu: 0.0.40
codegen_flags: <defaults>
</compile_context>

<pallas_src>
import math

import jax
import jax.numpy as jnp
from jax.experimental import pallas as pl
from jax.experimental.pallas import tpu as pltpu


# ----------------------------- Pallas kernel ------------------------------- #

def _critic_mlp_kernel(x_ref,
                       w1_ref, b1_ref,
                       w2_ref, b2_ref,
                       w3_ref, b3_ref,
                       w4_ref, b4_ref,
                       q_ref):
    """One batch-tile of the critic MLP: 3x (Linear+ReLU) -> Linear(1)."""
    x = x_ref[...]                                                    # (TB, Din) bf16

    # fc1 (concat + action scaling already fused into x in the wrapper)
    h = jnp.dot(x, w1_ref[...], preferred_element_type=jnp.float32) + b1_ref[...]
    h = jnp.maximum(h, 0.0).astype(jnp.bfloat16)

    # fc2
    h = jnp.dot(h, w2_ref[...], preferred_element_type=jnp.float32) + b2_ref[...]
    h = jnp.maximum(h, 0.0).astype(jnp.bfloat16)

    # fc3
    h = jnp.dot(h, w3_ref[...], preferred_element_type=jnp.float32) + b3_ref[...]
    h = jnp.maximum(h, 0.0).astype(jnp.bfloat16)

    # q_out (N=1): lane-dense head.  w4 (1,H) contracted against h (TB,H) on the
    # MXU gives a (1, TB) row -> full-lane stores instead of (TB,1) masked ones.
    q = jax.lax.dot_general(
        w4_ref[...], h,
        dimension_numbers=(((1,), (1,)), ((), ())),
        preferred_element_type=jnp.float32)                           # (1, TB)
    q = q + b4_ref[0, 0]
    q_ref[...] = q[None].astype(q_ref.dtype)                          # (1, 1, TB)


# ------------------------------ tile selection ------------------------------ #

def _round_up(x, m):
    return ((x + m - 1) // m) * m


def _choose_tb(batch, cap=512):
    """Batch tile: multiple of 8, big enough to amortize the ~0.35us per-step
    overhead, capped so there are >= 2 tiles for v7x's two TensorCores when the
    batch is large (v5e/v6e just see big tiles, which is what they want)."""
    if batch <= 128:
        return _round_up(batch, 8)
    half = _round_up(-(-batch // 2), 128)       # ceil(batch/2) rounded to 128
    return min(cap, half)


# --------------------------------- wrapper ---------------------------------- #

def dist_reverse_critic_forward(pi_inputs, actions, params, *, max_action, tb=None):
    """Forward pass of DistReverseCritic (== underlying Critic) via Pallas.

    pi_inputs: (B, obs+goal) float32
    actions:   (B, act)      float32
    returns:   (B, 1)        float32 q-values
    """
    w1, b1, w2, b2, w3, b3, w4, b4 = params

    B, dpi = pi_inputs.shape
    da = actions.shape[1]
    din = dpi + da
    hidden = w1.shape[1]

    if tb is None:
        tb = _choose_tb(B)
    tb = max(8, _round_up(int(tb), 8))          # sublane-dim of blocks must be /8

    n_tiles = pl.cdiv(B, tb)
    b_pad = n_tiles * tb

    # Fuse concat + 1/max_action into a single bf16 input (DMA'd as bf16).
    x = jnp.concatenate(
        [pi_inputs.astype(jnp.float32),
         actions.astype(jnp.float32) / jnp.float32(max_action)],
        axis=1).astype(jnp.bfloat16)
    if b_pad != B:
        x = jnp.pad(x, ((0, b_pad - B), (0, 0)))   # padded rows are independent

    # bf16 matmul operands, f32 biases (accumulation / epilogue stay f32).
    w1b = w1.astype(jnp.bfloat16)
    w2b = w2.astype(jnp.bfloat16)
    w3b = w3.astype(jnp.bfloat16)
    w4b = w4.reshape(1, hidden).astype(jnp.bfloat16)
    b1r = b1.reshape(1, hidden).astype(jnp.float32)
    b2r = b2.reshape(1, hidden).astype(jnp.float32)
    b3r = b3.reshape(1, hidden).astype(jnp.float32)
    b4r = b4.reshape(1, 1).astype(jnp.float32)

    # Whole-array blocks with constant index maps -> resident in VMEM.
    full = lambda shape: pl.BlockSpec(shape, lambda i, _s=len(shape): (0,) * _s)

    out = pl.pallas_call(
        _critic_mlp_kernel,
        out_shape=jax.ShapeDtypeStruct((n_tiles, 1, tb), jnp.float32),
        grid_spec=pltpu.PrefetchScalarGridSpec(
            num_scalar_prefetch=0,
            grid=(n_tiles,),
            in_specs=[
                pl.BlockSpec((tb, din), lambda i: (i, 0)),            # x tile
                full((din, hidden)), full((1, hidden)),               # fc1
                full((hidden, hidden)), full((1, hidden)),            # fc2
                full((hidden, hidden)), full((1, hidden)),            # fc3
                full((1, hidden)), full((1, 1)),                      # q_out
            ],
            out_specs=pl.BlockSpec((1, 1, tb), lambda i: (i, 0, 0)),  # lane-dense
        ),
        compiler_params=pltpu.CompilerParams(
            dimension_semantics=("parallel",)),
    )(x, w1b, b1r, w2b, b2r, w3b, b3r, w4b, b4r)

    return out.reshape(b_pad, 1)[:B]


# ------------------------- deterministic parameters ------------------------ #

def _linear_init(key, fan_in, fan_out):
    """PyTorch nn.Linear default init: U(-1/sqrt(fan_in), 1/sqrt(fan_in))."""
    kw, kb = jax.random.split(key)
    bound = 1.0 / math.sqrt(fan_in)
    w = jax.random.uniform(kw, (fan_in, fan_out), jnp.float32, -bound, bound)
    b = jax.random.uniform(kb, (fan_out,), jnp.float32, -bound, bound)
    return w, b


def make_critic_params(key, input_dim, hidden=256):
    k1, k2, k3, k4 = jax.random.split(key, 4)
    w1, b1 = _linear_init(k1, input_dim, hidden)
    w2, b2 = _linear_init(k2, hidden, hidden)
    w3, b3 = _linear_init(k3, hidden, hidden)
    w4, b4 = _linear_init(k4, hidden, 1)
    return (w1, b1, w2, b2, w3, b3, w4, b4)


# ------------------------------ references (JAX) ---------------------------- #

def _reference_forward_f32(pi_inputs, actions, params, max_action):
    """True module semantics in f32 (loose-tolerance check)."""
    w1, b1, w2, b2, w3, b3, w4, b4 = params
    x = jnp.concatenate([pi_inputs, actions / max_action], axis=1)
    h = jax.nn.relu(x @ w1 + b1)
    h = jax.nn.relu(h @ w2 + b2)
    h = jax.nn.relu(h @ w3 + b3)
    return h @ w4 + b4


def _reference_forward_bf16(pi_inputs, actions, params, max_action):
    """Same bf16-operand / f32-accumulate recipe as the kernel (tight check)."""
    w1, b1, w2, b2, w3, b3, w4, b4 = params
    x = jnp.concatenate([pi_inputs, actions / max_action], axis=1).astype(jnp.bfloat16)
    h = jnp.dot(x, w1.astype(jnp.bfloat16), preferred_element_type=jnp.float32) + b1
    h = jax.nn.relu(h).astype(jnp.bfloat16)
    h = jnp.dot(h, w2.astype(jnp.bfloat16), preferred_element_type=jnp.float32) + b2
    h = jax.nn.relu(h).astype(jnp.bfloat16)
    h = jnp.dot(h, w3.astype(jnp.bfloat16), preferred_element_type=jnp.float32) + b3
    h = jax.nn.relu(h).astype(jnp.bfloat16)
    return jnp.dot(h, w4.astype(jnp.bfloat16), preferred_element_type=jnp.float32) + b4


# ----------------------------------- main ----------------------------------- #

if __name__ == "__main__":
    # Small, forward-consistent shapes:
    #   env_params: obs=16, goal=4, action=4, action_max=2.0
    #   pi_inputs = concat(obs, goal) -> dim 20 ; actions -> dim 4
    obs_dim, goal_dim, act_dim = 16, 4, 4
    hidden = 256
    max_action = 2.0
    input_dim = obs_dim + goal_dim + act_dim  # 24

    key = jax.random.PRNGKey(0)
    k_params, k_pi, k_act, k_pi2, k_act2 = jax.random.split(key, 5)
    params = make_critic_params(k_params, input_dim, hidden)

    # --- small batch (single tile) ---
    batch = 8
    pi_inputs = jax.random.normal(k_pi, (batch, obs_dim + goal_dim), jnp.float32)
    actions = jax.random.uniform(k_act, (batch, act_dim), jnp.float32, -1.0, 1.0)

    q = dist_reverse_critic_forward(pi_inputs, actions, params, max_action=max_action)
    q = jax.block_until_ready(q)
    assert q.shape == (batch, 1)

    q_bf16_ref = _reference_forward_bf16(pi_inputs, actions, params, max_action)
    assert jnp.allclose(q, q_bf16_ref, atol=1e-3, rtol=1e-3), \
        "mismatch vs bf16-matched JAX reference (small batch)"
    q_f32_ref = _reference_forward_f32(pi_inputs, actions, params, max_action)
    assert jnp.allclose(q, q_f32_ref, atol=5e-2, rtol=5e-2), \
        "mismatch vs f32 JAX reference (small batch)"

    # --- larger batch (exercises multi-tile grid + padding + auto tile size) ---
    batch2 = 300
    pi2 = jax.random.normal(k_pi2, (batch2, obs_dim + goal_dim), jnp.float32)
    act2 = jax.random.uniform(k_act2, (batch2, act_dim), jnp.float32, -1.0, 1.0)

    q2 = dist_reverse_critic_forward(pi2, act2, params, max_action=max_action)
    q2 = jax.block_until_ready(q2)
    assert q2.shape == (batch2, 1)
    assert jnp.allclose(q2, _reference_forward_bf16(pi2, act2, params, max_action),
                        atol=1e-3, rtol=1e-3), \
        "mismatch vs bf16-matched JAX reference (multi-tile batch)"
    assert jnp.allclose(q2, _reference_forward_f32(pi2, act2, params, max_action),
                        atol=5e-2, rtol=5e-2), \
        "mismatch vs f32 JAX reference (multi-tile batch)"

    # TODO(synk): get_dist (clamp/log/gamma post-processing) is a tiny scalar
    # epilogue on the q-value and is not part of forward(); left out of the kernel.
    print("KERNEL_OK")
</pallas_src>

<mosaic_0001>
module attributes {stable_mosaic.version = 11 : i64} {
  func.func @_critic_mlp_kernel(%arg0: i32, %arg1: memref<8x24xbf16, #tpu.memory_space<vmem>>, %arg2: memref<24x256xbf16, #tpu.memory_space<vmem>>, %arg3: memref<1x256xf32, #tpu.memory_space<vmem>>, %arg4: memref<256x256xbf16, #tpu.memory_space<vmem>>, %arg5: memref<1x256xf32, #tpu.memory_space<vmem>>, %arg6: memref<256x256xbf16, #tpu.memory_space<vmem>>, %arg7: memref<1x256xf32, #tpu.memory_space<vmem>>, %arg8: memref<1x256xbf16, #tpu.memory_space<vmem>>, %arg9: memref<1x1xf32, #tpu.memory_space<vmem>>, %arg10: memref<1x1x8xf32, #tpu.memory_space<vmem>>) attributes {dimension_semantics = [#tpu.dimension_semantics<parallel>], iteration_bounds = array<i64: 1>, scalar_prefetch = 0 : i64, scratch_operands = 0 : i64, tpu.core_type = #tpu.core_type<tc>, window_params = [{transform_indices = @transform_0, window_bounds = array<i64: 8, 24>}, {pipeline_mode = #tpu.pipeline_mode<synchronous>, transform_indices = @transform_1, window_bounds = array<i64: 24, 256>}, {pipeline_mode = #tpu.pipeline_mode<synchronous>, transform_indices = @transform_2, window_bounds = array<i64: 1, 256>}, {pipeline_mode = #tpu.pipeline_mode<synchronous>, transform_indices = @transform_3, window_bounds = array<i64: 256, 256>}, {pipeline_mode = #tpu.pipeline_mode<synchronous>, transform_indices = @transform_4, window_bounds = array<i64: 1, 256>}, {pipeline_mode = #tpu.pipeline_mode<synchronous>, transform_indices = @transform_5, window_bounds = array<i64: 256, 256>}, {pipeline_mode = #tpu.pipeline_mode<synchronous>, transform_indices = @transform_6, window_bounds = array<i64: 1, 256>}, {pipeline_mode = #tpu.pipeline_mode<synchronous>, transform_indices = @transform_7, window_bounds = array<i64: 1, 256>}, {pipeline_mode = #tpu.pipeline_mode<synchronous>, transform_indices = @transform_8, window_bounds = array<i64: 1, 1>}, {transform_indices = @transform_9, window_bounds = array<i64: 1, 1, 8>}]} {
    %c0 = arith.constant 0 : index
    %c0_0 = arith.constant 0 : index
    %0 = vector.load %arg1[%c0, %c0_0] : memref<8x24xbf16, #tpu.memory_space<vmem>>, vector<8x24xbf16>
    %c0_1 = arith.constant 0 : index
    %c0_2 = arith.constant 0 : index
    %1 = vector.load %arg2[%c0_1, %c0_2] : memref<24x256xbf16, #tpu.memory_space<vmem>>, vector<24x256xbf16>
    %cst = arith.constant dense<0.000000e+00> : vector<8x256xf32>
    %2 = tpu.matmul %0, %1, %cst {dimension_numbers = #tpu.dot_dimension_numbers<[1], [0], [0], [1], [0, 0, 1, 1], [], []>} : vector<8x24xbf16>, vector<24x256xbf16>, vector<8x256xf32> -> vector<8x256xf32>
    %c0_3 = arith.constant 0 : index
    %c0_4 = arith.constant 0 : index
    %3 = vector.load %arg3[%c0_3, %c0_4] : memref<1x256xf32, #tpu.memory_space<vmem>>, vector<1x256xf32>
    %4 = vector.broadcast %3 : vector<1x256xf32> to vector<8x256xf32>
    %5 = arith.addf %2, %4 : vector<8x256xf32>
    %cst_5 = arith.constant 0.000000e+00 : f32
    %6 = vector.broadcast %cst_5 : f32 to vector<8x256xf32>
    %7 = arith.maximumf %5, %6 : vector<8x256xf32>
    %8 = arith.truncf %7 : vector<8x256xf32> to vector<8x256xbf16>
    %c0_6 = arith.constant 0 : index
    %c0_7 = arith.constant 0 : index
    %9 = vector.load %arg4[%c0_6, %c0_7] : memref<256x256xbf16, #tpu.memory_space<vmem>>, vector<256x256xbf16>
    %cst_8 = arith.constant dense<0.000000e+00> : vector<8x256xf32>
    %10 = tpu.matmul %8, %9, %cst_8 {dimension_numbers = #tpu.dot_dimension_numbers<[1], [0], [0], [1], [0, 0, 1, 1], [], []>} : vector<8x256xbf16>, vector<256x256xbf16>, vector<8x256xf32> -> vector<8x256xf32>
    %c0_9 = arith.constant 0 : index
    %c0_10 = arith.constant 0 : index
    %11 = vector.load %arg5[%c0_9, %c0_10] : memref<1x256xf32, #tpu.memory_space<vmem>>, vector<1x256xf32>
    %12 = vector.broadcast %11 : vector<1x256xf32> to vector<8x256xf32>
    %13 = arith.addf %10, %12 : vector<8x256xf32>
    %cst_11 = arith.constant 0.000000e+00 : f32
    %14 = vector.broadcast %cst_11 : f32 to vector<8x256xf32>
    %15 = arith.maximumf %13, %14 : vector<8x256xf32>
    %16 = arith.truncf %15 : vector<8x256xf32> to vector<8x256xbf16>
    %c0_12 = arith.constant 0 : index
    %c0_13 = arith.constant 0 : index
    %17 = vector.load %arg6[%c0_12, %c0_13] : memref<256x256xbf16, #tpu.memory_space<vmem>>, vector<256x256xbf16>
    %cst_14 = arith.constant dense<0.000000e+00> : vector<8x256xf32>
    %18 = tpu.matmul %16, %17, %cst_14 {dimension_numbers = #tpu.dot_dimension_numbers<[1], [0], [0], [1], [0, 0, 1, 1], [], []>} : vector<8x256xbf16>, vector<256x256xbf16>, vector<8x256xf32> -> vector<8x256xf32>
    %c0_15 = arith.constant 0 : index
    %c0_16 = arith.constant 0 : index
    %19 = vector.load %arg7[%c0_15, %c0_16] : memref<1x256xf32, #tpu.memory_space<vmem>>, vector<1x256xf32>
    %20 = vector.broadcast %19 : vector<1x256xf32> to vector<8x256xf32>
    %21 = arith.addf %18, %20 : vector<8x256xf32>
    %cst_17 = arith.constant 0.000000e+00 : f32
    %22 = vector.broadcast %cst_17 : f32 to vector<8x256xf32>
    %23 = arith.maximumf %21, %22 : vector<8x256xf32>
    %24 = arith.truncf %23 : vector<8x256xf32> to vector<8x256xbf16>
    %c0_18 = arith.constant 0 : index
    %c0_19 = arith.constant 0 : index
    %25 = vector.load %arg8[%c0_18, %c0_19] : memref<1x256xbf16, #tpu.memory_space<vmem>>, vector<1x256xbf16>
    %cst_20 = arith.constant dense<0.000000e+00> : vector<1x8xf32>
    %26 = tpu.matmul %25, %24, %cst_20 {dimension_numbers = #tpu.dot_dimension_numbers<[1], [1], [0], [0], [0, 0, 1, 0], [], []>} : vector<1x256xbf16>, vector<8x256xbf16>, vector<1x8xf32> -> vector<1x8xf32>
    %c0_21 = arith.constant 0 : index
    %c0_22 = arith.constant 0 : index
    %27 = vector.load %arg9[%c0_21, %c0_22] : memref<1x1xf32, #tpu.memory_space<vmem>>, vector<1x1xf32>
    %28 = vector.extract %27[0, 0] : f32 from vector<1x1xf32>
    %29 = vector.broadcast %28 : f32 to vector<1x8xf32>
    %30 = arith.addf %26, %29 : vector<1x8xf32>
    %31 = vector.shape_cast %30 : vector<1x8xf32> to vector<1x1x8xf32>
    %c0_23 = arith.constant 0 : index
    %c0_24 = arith.constant 0 : index
    %c0_25 = arith.constant 0 : index
    %32 = vector.load %arg10[%c0_23, %c0_24, %c0_25] : memref<1x1x8xf32, #tpu.memory_space<vmem>>, vector<1x1x8xf32>
    tpu.vector_store %arg10[%c0_23, %c0_24, %c0_25], %31 {strides = array<i32>} : memref<1x1x8xf32, #tpu.memory_space<vmem>>, vector<1x1x8xf32>,
    return
  }
  func.func @transform_0(%arg0: i32) -> (i32, i32) {
    %c0_i32 = arith.constant 0 : i32
    %c0_i32_0 = arith.constant 0 : i32
    return %arg0, %c0_i32 : i32, i32
  }
  func.func @transform_1(%arg0: i32) -> (i32, i32) {
    %c0_i32 = arith.constant 0 : i32
    %c0_i32_0 = arith.constant 0 : i32
    %c0_i32_1 = arith.constant 0 : i32
    return %c0_i32, %c0_i32_0 : i32, i32
  }
  func.func @transform_2(%arg0: i32) -> (i32, i32) {
    %c0_i32 = arith.constant 0 : i32
    %c0_i32_0 = arith.constant 0 : i32
    %c0_i32_1 = arith.constant 0 : i32
    return %c0_i32, %c0_i32_0 : i32, i32
  }
  func.func @transform_3(%arg0: i32) -> (i32, i32) {
    %c0_i32 = arith.constant 0 : i32
    %c0_i32_0 = arith.constant 0 : i32
    %c0_i32_1 = arith.constant 0 : i32
    return %c0_i32, %c0_i32_0 : i32, i32
  }
  func.func @transform_4(%arg0: i32) -> (i32, i32) {
    %c0_i32 = arith.constant 0 : i32
    %c0_i32_0 = arith.constant 0 : i32
    %c0_i32_1 = arith.constant 0 : i32
    return %c0_i32, %c0_i32_0 : i32, i32
  }
  func.func @transform_5(%arg0: i32) -> (i32, i32) {
    %c0_i32 = arith.constant 0 : i32
    %c0_i32_0 = arith.constant 0 : i32
    %c0_i32_1 = arith.constant 0 : i32
    return %c0_i32, %c0_i32_0 : i32, i32
  }
  func.func @transform_6(%arg0: i32) -> (i32, i32) {
    %c0_i32 = arith.constant 0 : i32
    %c0_i32_0 = arith.constant 0 : i32
    %c0_i32_1 = arith.constant 0 : i32
    return %c0_i32, %c0_i32_0 : i32, i32
  }
  func.func @transform_7(%arg0: i32) -> (i32, i32) {
    %c0_i32 = arith.constant 0 : i32
    %c0_i32_0 = arith.constant 0 : i32
    %c0_i32_1 = arith.constant 0 : i32
    return %c0_i32, %c0_i32_0 : i32, i32
  }
  func.func @transform_8(%arg0: i32) -> (i32, i32) {
    %c0_i32 = arith.constant 0 : i32
    %c0_i32_0 = arith.constant 0 : i32
    %c0_i32_1 = arith.constant 0 : i32
    return %c0_i32, %c0_i32_0 : i32, i32
  }
  func.func @transform_9(%arg0: i32) -> (i32, i32, i32) {
    %c0_i32 = arith.constant 0 : i32
    %c0_i32_0 = arith.constant 0 : i32
    %c0_i32_1 = arith.constant 0 : i32
    return %arg0, %c0_i32, %c0_i32_0 : i32, i32, i32
  }
}

</mosaic_0001>

<bundles_post_ra>
// kernel: tpu_custom_call.1
= control target key start
LH: loop header
LB: loop body
LE: loop exit
PB: predicated region body
PF: predicated region fallthrough
CT: control target
= control target key end

     0   :  { %s1151_s0 = inlined_call_operand.hbm [shape: bf16[8,24], index: 0, kind: input, shape index: {}]   ;;  %s1152_s1 = inlined_call_operand.hbm [shape: bf16[24,256], index: 1, kind: input, shape index: {}]   ;;  %s1153_s2 = inlined_call_operand.vmem [shape: f32[1,256], index: 2, kind: input, shape index: {}]   ;;  %s1154_s3 = inlined_call_operand.hbm [shape: bf16[256,256], index: 3, kind: input, shape index: {}]   ;;  %s1155_s4 = inlined_call_operand.vmem [shape: f32[1,256], index: 4, kind: input, shape index: {}]   ;;  %s1156_s5 = inlined_call_operand.hbm [shape: bf16[256,256], index: 5, kind: input, shape index: {}]   ;;  %s1157_s6 = inlined_call_operand.vmem [shape: f32[1,256], index: 6, kind: input, shape index: {}]   ;;  %s1158_s7 = inlined_call_operand.vmem [shape: bf16[1,256], index: 7, kind: input, shape index: {}]   ;;  %s1159_s8 = inlined_call_operand.<no memory space> [shape: f32[1,1], index: 8, kind: input, shape index: {}]   ;;  %s1160_s9 = inlined_call_operand.hbm [shape: f32[1,1,8], index: 9, kind: output, shape index: {}]  }
   0x1   :  { %v14_v0 = vstv %s1159_s8 }
   0x2   :  { %15 = vst [vmem:[#allocation2] sm:$0x1] %v14_v0 }
   0x3   :  { %16 = vsyncpa [#allocation4], 0 }
   0x4   :  { %17 = vsyncpa [#allocation7], 0 }
   0x5   :  { %18 = vsyncpa [#allocation10], 0 }
   0x6   :  { %19 = vsyncpa [#allocation5], 0  ;;  %s1053_s11 = smov [#allocation6]  }
   0x7   :  { %s35_s12 = sshll.u32 %s1053_s11, 4  ;;  %s36_s12 = int_to_ptr.vmem [resolvable:$true] %s35_s12 }
   0x8   :  { %s953_s13 = scalar_lea.vmem %s36_s12, 384  ;;  %p958_p1 = scmp.lt.s32.totalorder %s36_s12, %s36_s12 }
   0x9   :  { %p954_p0 = scmp.ne.s32.totalorder %s36_s12, %s953_s13  ;;  %p959_p2 = scmp.lt.s32.totalorder %s953_s13, %s953_s13 }
   0xb   :  { %p960_p3 = por %p959_p2, %p958_p1 }
   0xd   :  { %p961_p4 = pnand %p960_p3, %p954_p0 }
   0xf   :  { %964 = shalt.err (!%p961_p4)
}
  0x10   :  { %s1054_s14 = smov 128   ;;  %s1055_s15 = smov 8  }
  0x11   :  { %41 = dma.hbm_to_vmem [thread:$0]  %s1152_s1, 384, %s36_s12, [#allocation7], %s1054_s14, %s1054_s14, %s1055_s15  }
  0x12   :  { %s1056_s17 = smov [#allocation3]   ;;  %s1057_s19 = smov [#allocation8]  }
  0x13   :  { %s26_s18 = sshll.u32 %s1056_s17, 4  ;;  %s49_s20 = sshll.u32 %s1057_s19, 4  ;;  %s27_s18 = int_to_ptr.vmem [resolvable:$true] %s26_s18  ;;  %s50_s20 = int_to_ptr.vmem [resolvable:$true] %s49_s20 }
  0x14   :  { %s973_s21 = scalar_lea.vmem %s27_s18, 64  ;;  %p978_p6 = scmp.lt.s32.totalorder %s27_s18, %s27_s18 }
  0x15   :  { %p974_p5 = scmp.ne.s32.totalorder %s27_s18, %s973_s21  ;;  %p979_p7 = scmp.lt.s32.totalorder %s973_s21, %s973_s21 }
  0x17   :  { %p980_p8 = por %p979_p7, %p978_p6 }
  0x19   :  { %p981_p9 = pnand %p980_p8, %p974_p5 }
  0x1b   :  { %984 = shalt.err (!%p981_p9)
}
  0x1c   :  { %29 = dma.hbm_to_vmem [thread:$0]  %s1151_s0, 64, %s27_s18, [#allocation4]  }
  0x1d   :  { %s993_s24 = scalar_lea.vmem %s50_s20, 4096  ;;  %p998_p11 = scmp.lt.s32.totalorder %s50_s20, %s50_s20 }
  0x1e   :  { %p994_p10 = scmp.ne.s32.totalorder %s50_s20, %s993_s24  ;;  %p999_p12 = scmp.lt.s32.totalorder %s993_s24, %s993_s24 }
  0x20   :  { %p1000_p13 = por %p999_p12, %p998_p11 }
  0x22   :  { %p1001_p0 = pnand %p1000_p13, %p994_p10 }
  0x24   :  { %1004 = shalt.err (!%p1001_p0)
}
  0x25   :  { %55 = dma.hbm_to_vmem [thread:$0]  %s1154_s3, 4096, %s50_s20, [#allocation7], %s1054_s14, %s1054_s14, %s1055_s15  }
  0x26   :  { %s1058_s26 = smov [#allocation9]  }
  0x27   :  { %s63_s27 = sshll.u32 %s1058_s26, 4  ;;  %s64_s27 = int_to_ptr.vmem [resolvable:$true] %s63_s27 }
  0x28   :  { %s1013_s28 = scalar_lea.vmem %s64_s27, 4096  ;;  %p1018_p2 = scmp.lt.s32.totalorder %s64_s27, %s64_s27 }
  0x29   :  { %p1014_p1 = scmp.ne.s32.totalorder %s64_s27, %s1013_s28  ;;  %p1019_p3 = scmp.lt.s32.totalorder %s1013_s28, %s1013_s28 }
  0x2b   :  { %p1020_p4 = por %p1019_p3, %p1018_p2 }
  0x2d   :  { %p1021_p5 = pnand %p1020_p4, %p1014_p1 }
  0x2f   :  { %1024 = shalt.err (!%p1021_p5)
}
  0x30   :  { %69 = dma.hbm_to_vmem [thread:$0]  %s1156_s5, 4096, %s64_s27, [#allocation10], %s1054_s14, %s1054_s14, %s1055_s15  }
  0x31   :  { %1045 = dma.done.wait [#allocation4], 64  }
  0x32   :  { %1046 = vsyncadd [#allocation4], 4294967232 }
  0x33   :  { %1047 = dma.done.wait [#allocation7], 4480  }
  0x34   :  { %1048 = vsyncadd [#allocation7], 4294962816 }
  0x35   :  { %1049 = dma.done.wait [#allocation10], 4096  }
  0x36   :  { %1050 = vsyncadd [#allocation10], 4294963200  ;;  %v1059_v1 = vmov 0   ;;  %v92_v2 = vld [vmem:[#allocation6 + $0x10] sm:$0xff]  ;;  %vm124_vm0 = vcmask 1043456   ;;  %vm120_vm1 = vcmask 195584  }
  0x37   :  { %163 = vmatprep.mubr.bf16.mxu0 %v1059_v1  ;;  %v765_v3 = vcombine.high %v92_v2, %v92_v2  ;;  %v764_v4 = vcombine.low %v92_v2, %v92_v2  ;;  %v846_v5 = vld [vmem:[#allocation6 + $0x4] ss:$8 sps:$4 sm:$0xff]   ;;  %v851_v8 = vld [vmem:[#allocation8 + $0x70] ss:$8 sps:$4 sm:$0xff]   ;;  %v854_v11 = vld [vmem:[#allocation8 + $0x60] ss:$8 sps:$4 sm:$0xff]  }
  0x38   :  { %v849_v6 = vld [vmem:[#allocation8 + $0x74] ss:$8 sps:$4 sm:$0xff]   ;;  %v848_v9 = vld [vmem:[#allocation6] ss:$8 sps:$4 sm:$0xff]   ;;  %v852_v10 = vld [vmem:[#allocation8 + $0x64] ss:$8 sps:$4 sm:$0xff]  }
  0x39   :  { %766 = vmatprep.subr.msk.bf16.mxu0 %vm124_vm0, %v765_v3  ;;  %v126_v7 = vsel %vm124_vm0, %v764_v4, 0  ;;  %380 = vmatprep.subr.bf16.mxu1 %v849_v6  ;;  %v855_v12 = vld [vmem:[#allocation8 + $0x54] ss:$8 sps:$4 sm:$0xff]   ;;  %v89_v13 = vld [vmem:[#allocation3] sm:$0xf]  ;;  %s1061_s13 = smov [#allocation11]  }
  0x3a   :  { %144 = vmatpush1.bf16.msra.mxu0 %v126_v7  ;;  %381 = vmatpush1.bf16.msra.mxu1 %v851_v8  ;;  %v857_v14 = vld [vmem:[#allocation8 + $0x50] ss:$8 sps:$4 sm:$0xff]   ;;  %v858_v15 = vld [vmem:[#allocation8 + $0x44] ss:$8 sps:$4 sm:$0xff]   ;;  %v860_v16 = vld [vmem:[#allocation8 + $0x40] ss:$8 sps:$4 sm:$0xff]  }
  0x3b   :  { %145 = vmatprep.subr.bf16.mxu0 %v846_v5  ;;  %382 = vmatprep.subr.bf16.mxu1 %v852_v10  ;;  %v861_v17 = vld [vmem:[#allocation8 + $0x34] ss:$8 sps:$4 sm:$0xff]   ;;  %v863_v18 = vld [vmem:[#allocation8 + $0x30] ss:$8 sps:$4 sm:$0xff]   ;;  %v864_v19 = vld [vmem:[#allocation8 + $0x24] ss:$8 sps:$4 sm:$0xff]   ;;  %v95_v5 = vlaneseq }
  0x3c   :  { %v866_v20 = vld [vmem:[#allocation8 + $0x20] ss:$8 sps:$4 sm:$0xff]   ;;  %v867_v21 = vld [vmem:[#allocation8 + $0x14] ss:$8 sps:$4 sm:$0xff]   ;;  %v869_v22 = vld [vmem:[#allocation8 + $0x10] ss:$8 sps:$4 sm:$0xff]  }
  0x3d   :  { %v870_v23 = vld [vmem:[#allocation8 + $0x4] ss:$8 sps:$4 sm:$0xff]   ;;  %v872_v24 = vld [vmem:[#allocation8] ss:$8 sps:$4 sm:$0xff]   ;;  %v873_v25 = vld [vmem:[#allocation8 + $0xf4] ss:$8 sps:$4 sm:$0xff]  }
  0x3e   :  { %146 = vmatpush1.bf16.msra.mxu0 %v848_v9  ;;  %383 = vmatpush1.bf16.msra.mxu1 %v854_v11  ;;  %v875_v26 = vld [vmem:[#allocation8 + $0xf0] ss:$8 sps:$4 sm:$0xff]   ;;  %v876_v27 = vld [vmem:[#allocation8 + $0xe4] ss:$8 sps:$4 sm:$0xff]   ;;  %v878_v28 = vld [vmem:[#allocation8 + $0xe0] ss:$8 sps:$4 sm:$0xff]  }
  0x3f   :  { %384 = vmatprep.subr.bf16.mxu1 %v855_v12  ;;  %v879_v29 = vld [vmem:[#allocation8 + $0xd4] ss:$8 sps:$4 sm:$0xff]   ;;  %v881_v30 = vld [vmem:[#allocation8 + $0xd0] ss:$8 sps:$4 sm:$0xff]   ;;  %v882_v31 = vld [vmem:[#allocation8 + $0xc4] ss:$8 sps:$4 sm:$0xff]  }
  0x40   :  { %v884_v32 = vld [vmem:[#allocation8 + $0xc0] ss:$8 sps:$4 sm:$0xff]   ;;  %v885_v33 = vld [vmem:[#allocation8 + $0xb4] ss:$8 sps:$4 sm:$0xff]   ;;  %v887_v34 = vld [vmem:[#allocation8 + $0xb0] ss:$8 sps:$4 sm:$0xff]  }
  0x41   :  { %767 = vmatmul.mubr.msk.bf16.vlgmr.msra.gmra.mxu0 %vm120_vm1, %v89_v13  ;;  %v888_v35 = vld [vmem:[#allocation8 + $0xa4] ss:$8 sps:$4 sm:$0xff]   ;;  %v890_v36 = vld [vmem:[#allocation8 + $0xa0] ss:$8 sps:$4 sm:$0xff]   ;;  %v891_v37 = vld [vmem:[#allocation8 + $0x94] ss:$8 sps:$4 sm:$0xff]  }
  0x42   :  { %385 = vmatpush1.bf16.msra.mxu1 %v857_v14  ;;  %v893_v38 = vld [vmem:[#allocation8 + $0x90] ss:$8 sps:$4 sm:$0xff]   ;;  %v894_v39 = vld [vmem:[#allocation8 + $0x84] ss:$8 sps:$4 sm:$0xff]   ;;  %v896_v40 = vld [vmem:[#allocation8 + $0x80] ss:$8 sps:$4 sm:$0xff]  }
  0x43   :  { %386 = vmatprep.subr.bf16.mxu1 %v858_v15  ;;  %v897_v41 = vld [vmem:[#allocation9 + $0x70] ss:$8 sps:$4 sm:$0xff]   ;;  %v899_v42 = vld [vmem:[#allocation9 + $0x74] ss:$8 sps:$4 sm:$0xff]   ;;  %v902_v43 = vld [vmem:[#allocation9 + $0x64] ss:$8 sps:$4 sm:$0xff]  }
  0x44   :  { %629 = vmatprep.subr.bf16.mxu0 %v899_v42  ;;  %v900_v44 = vld [vmem:[#allocation9 + $0x60] ss:$8 sps:$4 sm:$0xff]   ;;  %v905_v45 = vld [vmem:[#allocation9 + $0x54] ss:$8 sps:$4 sm:$0xff]   ;;  %v903_v46 = vld [vmem:[#allocation9 + $0x50] ss:$8 sps:$4 sm:$0xff]  }
  0x45   :  { %630 = vmatpush1.bf16.msra.mxu0 %v897_v41  ;;  %v908_v47 = vld [vmem:[#allocation9 + $0x44] ss:$8 sps:$4 sm:$0xff]   ;;  %v906_v48 = vld [vmem:[#allocation9 + $0x40] ss:$8 sps:$4 sm:$0xff]   ;;  %v911_v49 = vld [vmem:[#allocation9 + $0x34] ss:$8 sps:$4 sm:$0xff]  }
  0x46   :  { %387 = vmatpush1.bf16.msra.mxu1 %v860_v16  ;;  %631 = vmatprep.subr.bf16.mxu0 %v902_v43  ;;  %v909_v50 = vld [vmem:[#allocation9 + $0x30] ss:$8 sps:$4 sm:$0xff]   ;;  %v914_v51 = vld [vmem:[#allocation9 + $0x24] ss:$8 sps:$4 sm:$0xff]   ;;  %v912_v52 = vld [vmem:[#allocation9 + $0x20] ss:$8 sps:$4 sm:$0xff]  }
  0x47   :  { %388 = vmatprep.subr.bf16.mxu1 %v861_v17  ;;  %v917_v53 = vld [vmem:[#allocation9 + $0x14] ss:$8 sps:$4 sm:$0xff]   ;;  %v915_v54 = vld [vmem:[#allocation9 + $0x10] ss:$8 sps:$4 sm:$0xff]   ;;  %v920_v55 = vld [vmem:[#allocation9 + $0x4] ss:$8 sps:$4 sm:$0xff]  }
  0x48   :  { %v918_v56 = vld [vmem:[#allocation9] ss:$8 sps:$4 sm:$0xff]   ;;  %v923_v57 = vld [vmem:[#allocation9 + $0xf4] ss:$8 sps:$4 sm:$0xff]   ;;  %v921_v58 = vld [vmem:[#allocation9 + $0xf0] ss:$8 sps:$4 sm:$0xff]  }
  0x49   :  { %632 = vmatpush1.bf16.msra.mxu0 %v900_v44  ;;  %v926_v59 = vld [vmem:[#allocation9 + $0xe4] ss:$8 sps:$4 sm:$0xff]   ;;  %v924_v60 = vld [vmem:[#allocation9 + $0xe0] ss:$8 sps:$4 sm:$0xff]   ;;  %v929_v61 = vld [vmem:[#allocation9 + $0xd4] ss:$8 sps:$4 sm:$0xff]  }
  0x4a   :  { %389 = vmatpush1.bf16.msra.mxu1 %v863_v18  ;;  %633 = vmatprep.subr.bf16.mxu0 %v905_v45  ;;  %v927_v62 = vld [vmem:[#allocation9 + $0xd0] ss:$8 sps:$4 sm:$0xff]   ;;  %v932_v63 = vld [vmem:[#allocation9 + $0xc4] ss:$8 sps:$4 sm:$0xff]   ;;  %v930_v0 = vld [vmem:[#allocation9 + $0xc0] ss:$8 sps:$4 sm:$0xff]  }
  0x4b   :  { %390 = vmatprep.subr.bf16.mxu1 %v864_v19  ;;  %v935_v1 = vld [vmem:[#allocation9 + $0xb4] ss:$8 sps:$4 sm:$0xff]   ;;  %v933_v2 = vld [vmem:[#allocation9 + $0xb0] ss:$8 sps:$4 sm:$0xff]   ;;  %v938_v3 = vld [vmem:[#allocation9 + $0xa4] ss:$8 sps:$4 sm:$0xff]  }
  0x4c   :  { %v936_v4 = vld [vmem:[#allocation9 + $0xa0] ss:$8 sps:$4 sm:$0xff]   ;;  %v96_v6 = vshrl.u32 %v95_v5, 7  ;;  %s751_s14 = sshll.u32 %s1061_s13, 4  ;;  %vm743_vm2 = vcmask 57344   ;;  %s752_s14 = int_to_ptr.vmem [resolvable:$true] %s751_s14 }
  0x4d   :  { %634 = vmatpush1.bf16.msra.mxu0 %v903_v46  ;;  %v93_v8 = vld [vmem:[%s1153_s2] sm:$0x3]  ;;  %s1029_s15 = scalar_lea.vmem %s752_s14, 32  ;;  %p1030_p7 = scmp.lt.s32.totalorder %s752_s14, %s752_s14 }
  0x4e   :  { %391 = vmatpush1.bf16.msra.mxu1 %v866_v20  ;;  %635 = vmatprep.subr.bf16.mxu0 %v908_v47  ;;  %v97_v7 = vsub.s32 0, %v96_v6  ;;  %v101_v9 = vsub.s32 1, %v96_v6  ;;  %v832_v41 = vld.sshfl [vmem:[%s1158_s7] sm:$0x11 pattern:$0x75316420] }
  0x4f   :  { %392 = vmatprep.subr.bf16.mxu1 %v867_v21  ;;  %v686_v43 = vcombine.high %v832_v41, %v832_v41  ;;  %v675_v47 = vld [vmem:[#allocation2] sm:$0x1] }
  0x50   :  { %v98_v10 = vrot.slane %v93_v8, %v97_v7  ;;  %v102_v11 = vrot.slane %v93_v8, %v101_v9  ;;  %833 = vpush %v675_v47 }
  0x51   :  { %636 = vmatpush1.bf16.msra.mxu0 %v906_v48  ;;  %v457_v48 = vld [vmem:[%s1157_s6] sm:$0x3]  ;;  %s1025_s6 = scalar_lea.vmem %s752_s14, 16 }
  0x52   :  { %393 = vmatpush1.bf16.msra.mxu1 %v869_v22  ;;  %637 = vmatprep.subr.bf16.mxu0 %v911_v49  ;;  %v941_v22 = vld [vmem:[#allocation9 + $0x94] ss:$8 sps:$4 sm:$0xff]   ;;  %v462_v49 = vrot.slane %v457_v48, %v97_v7  ;;  %p1026_p6 = scmp.ne.s32.totalorder %s752_s14, %s1025_s6  ;;  %p1031_p8 = scmp.lt.s32.totalorder %s1029_s15, %s1025_s6 }
  0x53   :  { %394 = vmatprep.subr.bf16.mxu1 %v870_v23  ;;  %v939_v23 = vld [vmem:[#allocation9 + $0x90] ss:$8 sps:$4 sm:$0xff]  }
  0x54   :  { %p1032_p9 = por %p1031_p8, %p1030_p7 }
  0x55   :  { %638 = vmatpush1.bf16.msra.mxu0 %v909_v50  ;;  %v466_v50 = vrot.slane %v457_v48, %v101_v9 }
  0x56   :  { %395 = vmatpush1.bf16.msra.mxu1 %v872_v24  ;;  %639 = vmatprep.subr.bf16.mxu0 %v914_v51  ;;  %v944_v24 = vld [vmem:[#allocation9 + $0x84] ss:$8 sps:$4 sm:$0xff]   ;;  %p1033_p10 = pnand %p1032_p9, %p1026_p6 }
  0x57   :  { %396 = vmatprep.subr.bf16.mxu1 %v873_v25  ;;  %v942_v25 = vld [vmem:[#allocation9 + $0x80] ss:$8 sps:$4 sm:$0xff]  }
  0x59   :  { %640 = vmatpush1.bf16.msra.mxu0 %v912_v52 }
  0x5a   :  { %397 = vmatpush2.bf16.msra.mxu1 %v875_v26  ;;  %641 = vmatprep.subr.bf16.mxu0 %v917_v53  ;;  %v208_v26 = vld [vmem:[%s1155_s4] sm:$0x3] }
  0x5b   :  { %398 = vmatprep.subr.bf16.mxu1 %v876_v27  ;;  %v213_v27 = vrot.slane %v208_v26, %v97_v7 }
  0x5d   :  { %642 = vmatpush1.bf16.msra.mxu0 %v915_v54 }
  0x5e   :  { %399 = vmatpush2.bf16.msra.mxu1 %v878_v28  ;;  %643 = vmatprep.subr.bf16.mxu0 %v920_v55  ;;  %v217_v28 = vrot.slane %v208_v26, %v101_v9 }
  0x5f   :  { %400 = vmatprep.subr.bf16.mxu1 %v879_v29 }
  0x61   :  { %644 = vmatpush1.bf16.msra.mxu0 %v918_v56 }
  0x62   :  { %401 = vmatpush2.bf16.msra.mxu1 %v881_v30  ;;  %645 = vmatprep.subr.bf16.mxu0 %v923_v57 }
  0x63   :  { %402 = vmatprep.subr.bf16.mxu1 %v882_v31 }
  0x65   :  { %646 = vmatpush2.bf16.msra.mxu0 %v921_v58 }
  0x66   :  { %403 = vmatpush2.bf16.msra.mxu1 %v884_v32  ;;  %647 = vmatprep.subr.bf16.mxu0 %v926_v59 }
  0x67   :  { %404 = vmatprep.subr.bf16.mxu1 %v885_v33 }
  0x69   :  { %648 = vmatpush2.bf16.msra.mxu0 %v924_v60 }
  0x6a   :  { %405 = vmatpush2.bf16.msra.mxu1 %v887_v34  ;;  %649 = vmatprep.subr.bf16.mxu0 %v929_v61 }
  0x6b   :  { %406 = vmatprep.subr.bf16.mxu1 %v888_v35 }
  0x6d   :  { %650 = vmatpush2.bf16.msra.mxu0 %v927_v62 }
  0x6e   :  { %407 = vmatpush2.bf16.msra.mxu1 %v890_v36  ;;  %651 = vmatprep.subr.bf16.mxu0 %v932_v63 }
  0x6f   :  { %408 = vmatprep.subr.bf16.mxu1 %v891_v37 }
  0x71   :  { %652 = vmatpush2.bf16.msra.mxu0 %v930_v0 }
  0x72   :  { %409 = vmatpush2.bf16.msra.mxu1 %v893_v38  ;;  %653 = vmatprep.subr.bf16.mxu0 %v935_v1 }
  0x73   :  { %410 = vmatprep.subr.bf16.mxu1 %v894_v39  ;;  %v1060_v39 = vmov 1966171168  }
  0x75   :  { %654 = vmatpush2.bf16.msra.mxu0 %v933_v2 }
  0x76   :  { %411 = vmatpush2.bf16.msra.mxu1 %v896_v40  ;;  %655 = vmatprep.subr.bf16.mxu0 %v938_v3  ;;  %v688_v40 = vunpack.c.l.s4 %v1060_v39 }
  0x78   :  { %v689_v42 = vunpack.c.0.s8 %v688_v40 }
  0x79   :  { %656 = vmatpush2.bf16.msra.mxu0 %v936_v4 }
  0x7a   :  { %657 = vmatprep.subr.bf16.mxu0 %v941_v22  ;;  %v692_v44 = vsub.s32 %v689_v42, %v96_v6 }
  0x7c   :  { %v700_v45 = vrot.slane %v686_v43, %v692_v44  ;;  %v693_v46 = vrot.slane %v832_v41, %v692_v44 }
  0x7d   :  { %658 = vmatpush2.bf16.msra.mxu0 %v939_v23 }
  0x7e   :  { %659 = vmatprep.subr.bf16.mxu0 %v944_v24 }
  0x81   :  { %660 = vmatpush2.bf16.msra.mxu0 %v942_v25  ;;  %s834_s7 = spop %833 }
  0x82   :  { %v677_v61 = vstv %s834_s7 }
 0x101   :  { %v165_v12 = vpop.f32.mrf.mxu0 }
 0x102   :  { %v166_v13 = vadd.f32 %v165_v12, %v98_v10 }
 0x103   :  { %v167_v14 = vpop.f32.mrf.mxu0 }
 0x104   :  { %v168_v15 = vadd.f32 %v167_v14, %v102_v11  ;;  %v172_v16 = vmax.f32 %v166_v13, 0.0 }
 0x105   :  { %v169_v17 = vpop.f32.mrf.mxu0 }
 0x106   :  { %v173_v18 = vmax.f32 %v168_v15, 0.0  ;;  %v174_v21 = vpack.c.bf16 %v172_v16, %v172_v16 }
 0x107   :  { %v170_v19 = vpop.f32.mrf.mxu0 }
 0x108   :  { %v175_v20 = vpack.c.bf16 %v173_v18, %v173_v18 }
 0x10a   :  { %412 = vmatprep.mubr.bf16.mxu1 %v175_v20 }
 0x10b   :  { %413 = vmatmul.mubr.bf16.vlgmr.msra.gmra.mxu1 %v174_v21 }
 0x10c   :  { %735 = vmatprep.mubr.bf16.mxu1 %v700_v45 }
 0x1cb   :  { %v414_v29 = vpop.f32.mrf.mxu1 }
 0x1cc   :  { %v415_v30 = vadd.f32 %v414_v29, %v213_v27 }
 0x1cd   :  { %v416_v31 = vpop.f32.mrf.mxu1 }
 0x1ce   :  { %v417_v32 = vadd.f32 %v416_v31, %v217_v28  ;;  %v421_v33 = vmax.f32 %v415_v30, 0.0 }
 0x1cf   :  { %v418_v34 = vpop.f32.mrf.mxu1 }
 0x1d0   :  { %v422_v35 = vmax.f32 %v417_v32, 0.0  ;;  %v423_v38 = vpack.c.bf16 %v421_v33, %v421_v33 }
 0x1d1   :  { %v419_v36 = vpop.f32.mrf.mxu1 }
 0x1d2   :  { %v424_v37 = vpack.c.bf16 %v422_v35, %v422_v35 }
 0x1d4   :  { %661 = vmatprep.mubr.bf16.mxu0 %v424_v37 }
 0x1d5   :  { %662 = vmatmul.mubr.bf16.vlgmr.msra.gmra.mxu0 %v423_v38 }
 0x295   :  { %v663_v51 = vpop.f32.mrf.mxu0 }
 0x296   :  { %v664_v52 = vadd.f32 %v663_v51, %v462_v49 }
 0x297   :  { %v665_v53 = vpop.f32.mrf.mxu0 }
 0x298   :  { %v666_v54 = vadd.f32 %v665_v53, %v466_v50  ;;  %v670_v55 = vmax.f32 %v664_v52, 0.0 }
 0x299   :  { %v667_v56 = vpop.f32.mrf.mxu0 }
 0x29a   :  { %v671_v57 = vmax.f32 %v666_v54, 0.0  ;;  %v672_v60 = vpack.c.bf16 %v670_v55, %v670_v55 }
 0x29b   :  { %v668_v58 = vpop.f32.mrf.mxu0 }
 0x29c   :  { %v673_v59 = vpack.c.bf16 %v671_v57, %v671_v57 }
 0x29e   :  { %717 = vmatprep.subr.bf16.mxu1 %v673_v59 }
 0x29f   :  { %718 = vmatpush1.bf16.xpose.msra.mxu1 %v672_v60 }
 0x2a6   :  { %736 = vmatmul.mubr.bf16.vlgmr.msra.gmra.mxu1 %v693_v46 }
 0x366   :  { %v737_v62 = vpop.f32.mrf.mxu1 }
 0x367   :  { %v738_v63 = vadd.f32 %v737_v62, %v677_v61 }
 0x368   :  { %v739_v0 = vpop.f32.mrf.mxu1 }
 0x369   :  { %744 = vst.msk [vmem:[#allocation11] sm:$0x1] %vm743_vm2, %v738_v63 }
 0x36a   :  { %v740_v1 = vpop.f32.mrf.mxu1 }
 0x36b   :  { %1036 = shalt.err (!%p1033_p10)
}
 0x36c   :  { %754 = dma.vmem_to_hbm [thread:$0]  %s752_s14, 16, %s1160_s9, [#allocation5]   ;;  %v741_v2 = vpop.f32.mrf.mxu1 }
 0x36d   :  { %1051 = dma.done.wait [#allocation5], 16  }
 0x36e   :  { %1052 = vsyncadd [#allocation5], 4294967280 }
 0x36f   :  { %758 = vsyncpa [#allocation4], 1 }
 0x370   :  { %759 = vsyncpa [#allocation7], 1 }
 0x371   :  { %760 = vsyncpa [#allocation10], 1 }
 0x372   :  { %761 = vsyncpa [#allocation5], 1 }

</bundles_post_ra>
